<compile_context>
chip_gen: v7x
topology: tpu7x:2x2x1
jax: 0.10.0
libtpu: 0.0.40
codegen_flags: <defaults>
</compile_context>

<pallas_src>
import jax
import jax.numpy as jnp
from jax.experimental import pallas as pl
from jax.experimental.pallas import tpu as pltpu


# ---- packed-weight layout (rows, 128 lanes wide, zero padded) --------------
# rows   0:  8   W1  (real: [0:4,   0:10])
# rows   8: 16   b1  (real: [8,     0:10])
# rows  16:144   W2  (real: [16:26, 0:10])
# rows 144:152   b2  (real: [144,   0:10])
# rows 152:280   W3  (real: [152:162, 0:4])
# rows 280:288   b3  (real: [280,   0:4])
_PACKED_ROWS = 288
_LANES = 128
_F_IN = 4
_F_OUT = 4


def mlp_kernel(x_ref, wp_ref, o_ref):
    x = x_ref[...]                                  # [TB, 4]

    w1 = wp_ref[0:8, :]                             # [8, 128] (rows 4..7 zero)
    b1 = wp_ref[8:9, :]                             # [1, 128]
    w2 = wp_ref[16:144, :]                          # [128, 128]
    b2 = wp_ref[144:145, :]                         # [1, 128]
    w3 = wp_ref[152:280, :]                         # [128, 128]
    b3 = wp_ref[280:281, :]                         # [1, 128]

    # Layer 1: K=4 contraction as 4 VPU broadcast-FMAs (a K=4 matmul would
    # just waste an MXU push/pop chain).  Padded lanes of b1/w1 are zero.
    h1 = b1 + x[:, 0:1] * w1[0:1, :]
    h1 = h1 + x[:, 1:2] * w1[1:2, :]
    h1 = h1 + x[:, 2:3] * w1[2:3, :]
    h1 = h1 + x[:, 3:4] * w1[3:4, :]
    h1 = jnp.maximum(h1, 0.0)                       # ReLU; padded lanes stay 0

    h2 = jnp.dot(h1, w2, preferred_element_type=jnp.float32) + b2
    # sigmoid(x) == 0.5 * tanh(0.5 * x) + 0.5 : one EUP op per element.
    h2 = 0.5 * jnp.tanh(0.5 * h2) + 0.5             # padded lanes -> 0.5, but
                                                    # W3's padded rows are 0

    out = jnp.dot(h2, w3, preferred_element_type=jnp.float32) + b3
    o_ref[...] = out[:, 0:_F_OUT]                   # narrow (TB, 4) store


def _round_up(n, m):
    return ((n + m - 1) // m) * m


def pack_params(params):
    """Pack all weights/biases into one lane-aligned (288, 128) f32 slab.

    Call ONCE per parameter set (hoisted out of the forward pass); re-pack
    whenever the underlying params change.
    """
    w1, b1, w2, b2, w3, b3 = params  # (4,10),(1,10),(10,10),(1,10),(10,4),(1,4)
    packed = jnp.zeros((_PACKED_ROWS, _LANES), jnp.float32)
    packed = packed.at[0:4, 0:10].set(w1)
    packed = packed.at[8, 0:10].set(b1[0])
    packed = packed.at[16:26, 0:10].set(w2)
    packed = packed.at[144, 0:10].set(b2[0])
    packed = packed.at[152:162, 0:4].set(w3)
    packed = packed.at[280, 0:4].set(b3[0])
    return packed


def mlp_forward(x, w_packed, *, block_rows=2048):
    """x: [B, 4] f32, w_packed: pack_params(...) -> [B, 4] f32."""
    B = x.shape[0]

    # Batch tile: multiple of 8 sublanes, capped at block_rows, and capped at
    # ~half the padded batch so the "parallel" grid axis has >=2 steps for
    # B >= 16 (keeps both TensorCores busy on v7x; harmless on v5e/v6e).
    Bp8 = _round_up(max(B, 1), 8)
    half = _round_up((Bp8 + 1) // 2, 8)
    TB = max(8, min(block_rows, half))
    Bp = _round_up(Bp8, TB)

    # Only pad the batch dim (feature dim stays at its real width of 4).
    if Bp == B:
        xp = x
    else:
        xp = jnp.zeros((Bp, _F_IN), jnp.float32).at[:B, :].set(x)

    out = pl.pallas_call(
        mlp_kernel,
        out_shape=jax.ShapeDtypeStruct((Bp, _F_OUT), jnp.float32),
        grid_spec=pltpu.PrefetchScalarGridSpec(
            num_scalar_prefetch=0,
            grid=(Bp // TB,),
            in_specs=[
                pl.BlockSpec((TB, _F_IN), lambda i: (i, 0)),
                # one packed weight slab, same block every grid step
                # (single-buffering it would save 144 KiB VMEM; not needed
                #  now that the output block is only 4 lanes wide)
                pl.BlockSpec((_PACKED_ROWS, _LANES), lambda i: (0, 0)),
            ],
            out_specs=pl.BlockSpec((TB, _F_OUT), lambda i: (i, 0)),
        ),
        compiler_params=pltpu.CompilerParams(
            dimension_semantics=("parallel",),   # shards across 2 TCs on v7x
        ),
    )(xp, w_packed)

    if Bp == B:
        return out
    return out[:B, :]


def init_params(key):
    """Deterministic init matching nn.Linear default (U(-1/sqrt(in), 1/sqrt(in)))."""
    def linear(key, fan_in, fan_out):
        kw, kb = jax.random.split(key)
        bound = 1.0 / jnp.sqrt(float(fan_in))
        # stored as (in, out): transpose of torch's (out, in)
        w = jax.random.uniform(kw, (fan_in, fan_out), jnp.float32, -bound, bound)
        b = jax.random.uniform(kb, (1, fan_out), jnp.float32, -bound, bound)
        return w, b

    k1, k2, k3 = jax.random.split(key, 3)
    w1, b1 = linear(k1, 4, 10)
    w2, b2 = linear(k2, 10, 10)
    w3, b3 = linear(k3, 10, 4)
    return (w1, b1, w2, b2, w3, b3)


def mlp_reference(x, params):
    w1, b1, w2, b2, w3, b3 = params
    h1 = jnp.maximum(x @ w1 + b1, 0.0)
    h2 = jax.nn.sigmoid(h1 @ w2 + b2)
    return h2 @ w3 + b3


if __name__ == "__main__":
    key = jax.random.PRNGKey(0)
    kx, kx2, kp = jax.random.split(key, 3)

    params = init_params(kp)
    w_packed = jax.block_until_ready(pack_params(params))  # packed once

    fwd = jax.jit(mlp_forward)

    # Small batch (single grid step).
    B1 = 8
    x1 = jax.random.normal(kx, (B1, _F_IN), jnp.float32)
    out1 = jax.block_until_ready(fwd(x1, w_packed))
    ref1 = mlp_reference(x1, params)
    assert out1.shape == (B1, _F_OUT)
    assert jnp.allclose(out1, ref1, atol=1e-5, rtol=1e-5), "mismatch vs reference (B=8)"

    # Slightly larger, non-tile-multiple batch (multi-step grid + batch pad).
    B2 = 40
    x2 = jax.random.normal(kx2, (B2, _F_IN), jnp.float32)
    out2 = jax.block_until_ready(fwd(x2, w_packed))
    ref2 = mlp_reference(x2, params)
    assert out2.shape == (B2, _F_OUT)
    assert jnp.allclose(out2, ref2, atol=1e-5, rtol=1e-5), "mismatch vs reference (B=40)"

    print("KERNEL_OK")
</pallas_src>

<mosaic_0001>
module attributes {stable_mosaic.version = 11 : i64} {
  func.func @mlp_kernel(%arg0: i32, %arg1: memref<8x4xf32, #tpu.memory_space<vmem>>, %arg2: memref<288x128xf32, #tpu.memory_space<vmem>>, %arg3: memref<8x4xf32, #tpu.memory_space<vmem>>) attributes {dimension_semantics = [#tpu.dimension_semantics<parallel>], iteration_bounds = array<i64: 1>, scalar_prefetch = 0 : i64, scratch_operands = 0 : i64, tpu.core_type = #tpu.core_type<tc>, window_params = [{transform_indices = @transform_0, window_bounds = array<i64: 8, 4>}, {pipeline_mode = #tpu.pipeline_mode<synchronous>, transform_indices = @transform_1, window_bounds = array<i64: 288, 128>}, {transform_indices = @transform_2, window_bounds = array<i64: 8, 4>}]} {
    %c0 = arith.constant 0 : index
    %c0_0 = arith.constant 0 : index
    %0 = vector.load %arg1[%c0, %c0_0] : memref<8x4xf32, #tpu.memory_space<vmem>>, vector<8x4xf32>
    %c0_1 = arith.constant 0 : index
    %c0_2 = arith.constant 0 : index
    %1 = vector.load %arg2[%c0_1, %c0_2] : memref<288x128xf32, #tpu.memory_space<vmem>>, vector<8x128xf32>
    %c8 = arith.constant 8 : index
    %c0_3 = arith.constant 0 : index
    %2 = vector.load %arg2[%c8, %c0_3] : memref<288x128xf32, #tpu.memory_space<vmem>>, vector<1x128xf32>
    %c16 = arith.constant 16 : index
    %c0_4 = arith.constant 0 : index
    %3 = vector.load %arg2[%c16, %c0_4] : memref<288x128xf32, #tpu.memory_space<vmem>>, vector<128x128xf32>
    %c144 = arith.constant 144 : index
    %c0_5 = arith.constant 0 : index
    %4 = vector.load %arg2[%c144, %c0_5] : memref<288x128xf32, #tpu.memory_space<vmem>>, vector<1x128xf32>
    %c152 = arith.constant 152 : index
    %c0_6 = arith.constant 0 : index
    %5 = vector.load %arg2[%c152, %c0_6] : memref<288x128xf32, #tpu.memory_space<vmem>>, vector<128x128xf32>
    %c280 = arith.constant 280 : index
    %c0_7 = arith.constant 0 : index
    %6 = vector.load %arg2[%c280, %c0_7] : memref<288x128xf32, #tpu.memory_space<vmem>>, vector<1x128xf32>
    %7 = vector.extract_strided_slice %0 {offsets = [0, 0], sizes = [8, 1], strides = [1, 1]} : vector<8x4xf32> to vector<8x1xf32>
    %8 = vector.extract_strided_slice %1 {offsets = [0, 0], sizes = [1, 128], strides = [1, 1]} : vector<8x128xf32> to vector<1x128xf32>
    %9 = vector.broadcast %7 : vector<8x1xf32> to vector<8x128xf32>
    %10 = vector.broadcast %8 : vector<1x128xf32> to vector<8x128xf32>
    %11 = arith.mulf %9, %10 : vector<8x128xf32>
    %12 = vector.broadcast %2 : vector<1x128xf32> to vector<8x128xf32>
    %13 = arith.addf %12, %11 : vector<8x128xf32>
    %14 = vector.extract_strided_slice %0 {offsets = [0, 1], sizes = [8, 1], strides = [1, 1]} : vector<8x4xf32> to vector<8x1xf32>
    %15 = vector.extract_strided_slice %1 {offsets = [1, 0], sizes = [1, 128], strides = [1, 1]} : vector<8x128xf32> to vector<1x128xf32>
    %16 = vector.broadcast %14 : vector<8x1xf32> to vector<8x128xf32>
    %17 = vector.broadcast %15 : vector<1x128xf32> to vector<8x128xf32>
    %18 = arith.mulf %16, %17 : vector<8x128xf32>
    %19 = arith.addf %13, %18 : vector<8x128xf32>
    %20 = vector.extract_strided_slice %0 {offsets = [0, 2], sizes = [8, 1], strides = [1, 1]} : vector<8x4xf32> to vector<8x1xf32>
    %21 = vector.extract_strided_slice %1 {offsets = [2, 0], sizes = [1, 128], strides = [1, 1]} : vector<8x128xf32> to vector<1x128xf32>
    %22 = vector.broadcast %20 : vector<8x1xf32> to vector<8x128xf32>
    %23 = vector.broadcast %21 : vector<1x128xf32> to vector<8x128xf32>
    %24 = arith.mulf %22, %23 : vector<8x128xf32>
    %25 = arith.addf %19, %24 : vector<8x128xf32>
    %26 = vector.extract_strided_slice %0 {offsets = [0, 3], sizes = [8, 1], strides = [1, 1]} : vector<8x4xf32> to vector<8x1xf32>
    %27 = vector.extract_strided_slice %1 {offsets = [3, 0], sizes = [1, 128], strides = [1, 1]} : vector<8x128xf32> to vector<1x128xf32>
    %28 = vector.broadcast %26 : vector<8x1xf32> to vector<8x128xf32>
    %29 = vector.broadcast %27 : vector<1x128xf32> to vector<8x128xf32>
    %30 = arith.mulf %28, %29 : vector<8x128xf32>
    %31 = arith.addf %25, %30 : vector<8x128xf32>
    %cst = arith.constant 0.000000e+00 : f32
    %32 = vector.broadcast %cst : f32 to vector<8x128xf32>
    %33 = arith.maximumf %31, %32 : vector<8x128xf32>
    %cst_8 = arith.constant dense<0.000000e+00> : vector<8x128xf32>
    %34 = tpu.matmul %33, %3, %cst_8 {dimension_numbers = #tpu.dot_dimension_numbers<[1], [0], [0], [1], [0, 0, 1, 1], [], []>} : vector<8x128xf32>, vector<128x128xf32>, vector<8x128xf32> -> vector<8x128xf32>
    %35 = vector.broadcast %4 : vector<1x128xf32> to vector<8x128xf32>
    %36 = arith.addf %34, %35 : vector<8x128xf32>
    %cst_9 = arith.constant 5.000000e-01 : f32
    %37 = vector.broadcast %cst_9 : f32 to vector<8x128xf32>
    %38 = arith.mulf %37, %36 : vector<8x128xf32>
    %39 = math.tanh %38 : vector<8x128xf32>
    %cst_10 = arith.constant 5.000000e-01 : f32
    %40 = vector.broadcast %cst_10 : f32 to vector<8x128xf32>
    %41 = arith.mulf %40, %39 : vector<8x128xf32>
    %cst_11 = arith.constant 5.000000e-01 : f32
    %42 = vector.broadcast %cst_11 : f32 to vector<8x128xf32>
    %43 = arith.addf %41, %42 : vector<8x128xf32>
    %cst_12 = arith.constant dense<0.000000e+00> : vector<8x128xf32>
    %44 = tpu.matmul %43, %5, %cst_12 {dimension_numbers = #tpu.dot_dimension_numbers<[1], [0], [0], [1], [0, 0, 1, 1], [], []>} : vector<8x128xf32>, vector<128x128xf32>, vector<8x128xf32> -> vector<8x128xf32>
    %45 = vector.broadcast %6 : vector<1x128xf32> to vector<8x128xf32>
    %46 = arith.addf %44, %45 : vector<8x128xf32>
    %47 = vector.extract_strided_slice %46 {offsets = [0, 0], sizes = [8, 4], strides = [1, 1]} : vector<8x128xf32> to vector<8x4xf32>
    %c0_13 = arith.constant 0 : index
    %c0_14 = arith.constant 0 : index
    %48 = vector.load %arg3[%c0_13, %c0_14] : memref<8x4xf32, #tpu.memory_space<vmem>>, vector<8x4xf32>
    tpu.vector_store %arg3[%c0_13, %c0_14], %47 {strides = array<i32>} : memref<8x4xf32, #tpu.memory_space<vmem>>, vector<8x4xf32>,
    return
  }
  func.func @transform_0(%arg0: i32) -> (i32, i32) {
    %c0_i32 = arith.constant 0 : i32
    %c0_i32_0 = arith.constant 0 : i32
    return %arg0, %c0_i32 : i32, i32
  }
  func.func @transform_1(%arg0: i32) -> (i32, i32) {
    %c0_i32 = arith.constant 0 : i32
    %c0_i32_0 = arith.constant 0 : i32
    %c0_i32_1 = arith.constant 0 : i32
    return %c0_i32, %c0_i32_0 : i32, i32
  }
  func.func @transform_2(%arg0: i32) -> (i32, i32) {
    %c0_i32 = arith.constant 0 : i32
    %c0_i32_0 = arith.constant 0 : i32
    return %arg0, %c0_i32 : i32, i32
  }
}

</mosaic_0001>

<bundles_post_ra>
// kernel: mlp_forward.1
= control target key start
LH: loop header
LB: loop body
LE: loop exit
PB: predicated region body
PF: predicated region fallthrough
CT: control target
= control target key end

     0   :  { %7 = vsyncpa [#allocation3], 0  ;;  %s463_s9 = smov [#allocation2]   ;;  %s522_s0 = inlined_call_operand.vmem [shape: f32[8,4], index: 0, kind: input, shape index: {}]   ;;  %s523_s1 = inlined_call_operand.hbm [shape: f32[288,128], index: 1, kind: input, shape index: {}]   ;;  %s524_s2 = inlined_call_operand.vmem [shape: f32[8,4], index: 2, kind: output, shape index: {}]  }
   0x1   :  { %s15_s10 = sshll.u32 %s463_s9, 4  ;;  %s439_s13 = scalar_lea.hbm %s523_s1, 4608  ;;  %s16_s10 = int_to_ptr.vmem [resolvable:$true] %s15_s10 }
   0x2   :  { %p440_p0 = scmp.ne.s32.totalorder %s523_s1, %s439_s13  ;;  %p443_p1 = scmp.lt.u32.totalorder %s439_s13, %s523_s1 }
   0x4   :  { %p445_p2 = pnand %p443_p1, %p440_p0 }
   0x6   :  { %448 = shalt.err (!%p445_p2)
}
   0x7   :  { %s449_s18 = scalar_lea.vmem %s16_s10, 4608  ;;  %p454_p4 = scmp.lt.s32.totalorder %s16_s10, %s16_s10 }
   0x8   :  { %p450_p3 = scmp.ne.s32.totalorder %s16_s10, %s449_s18  ;;  %p455_p5 = scmp.lt.s32.totalorder %s449_s18, %s449_s18 }
   0xa   :  { %p456_p6 = por %p455_p5, %p454_p4 }
   0xc   :  { %p457_p7 = pnand %p456_p6, %p450_p3 }
   0xe   :  { %460 = shalt.err (!%p457_p7)
}
   0xf   :  { %s464_s19 = smov 128   ;;  %s465_s20 = smov 8  }
  0x10   :  { %21 = dma.hbm_to_vmem [thread:$0]  %s523_s1, 4608, %s16_s10, [#allocation3], %s464_s19, %s464_s19, %s465_s20  }
  0x11   :  { %461 = dma.done.wait [#allocation3], 4608  }
  0x12   :  { %462 = vsyncadd [#allocation3], 4294962688  ;;  %v466_v0 = vmov 0   ;;  %v467_v1 = vmov 2   ;;  %v468_v2 = vmov 0.0|0.0   ;;  %v25_v3 = vld [vmem:[%s522_s0] sm:$0xff]  ;;  %v67_v40 = vlaneseq }
  0x13   :  { %432 = vset.pattern.permute.xlu0 %v466_v0  ;;  %434 = vset.pattern.permute.xlu1 %v467_v1  ;;  %v28_v4 = vld [vmem:[#allocation2 + $0x10] sm:$0xff]  ;;  %v29_v5 = vld [vmem:[#allocation2 + $0x18] sm:$0xff]  ;;  %v30_v7 = vld [vmem:[#allocation2 + $0x20] sm:$0xff]  ;;  %v469_v12 = vmov 1   ;;  %v470_v13 = vmov 3   ;;  %vm471_vm0 = vmmov 0  }
  0x14   :  { %374 = vmatprep.subr.bf16.mxu0 %v468_v2  ;;  %398 = vmatprep.subr.bf16.mxu1 %v468_v2  ;;  %v375_v6 = vpack.c.bf16 %v29_v5, %v28_v4  ;;  %v31_v8 = vld [vmem:[#allocation2 + $0x28] sm:$0xff]  ;;  %v32_v10 = vld [vmem:[#allocation2 + $0x30] sm:$0xff]  ;;  %v33_v11 = vld [vmem:[#allocation2 + $0x38] sm:$0xff]  ;;  %v472_v23 = vmov 0.0   ;;  %v68_v41 = vshrl.u32 %v67_v40, 7  ;;  %vm260_vm1 = vcmask 31744  }
  0x15   :  { %64 = vperm.xlu0 %432, %v25_v3   ;;  %88 = vperm.xlu1 %434, %v25_v3   ;;  %v378_v9 = vpack.c.bf16 %v31_v8, %v30_v7  ;;  %v381_v14 = vpack.c.bf16 %v33_v11, %v32_v10  ;;  %v34_v15 = vld [vmem:[#allocation2 + $0x40] sm:$0xff]  ;;  %v35_v16 = vld [vmem:[#allocation2 + $0x48] sm:$0xff]  ;;  %v36_v18 = vld [vmem:[#allocation2 + $0x50] sm:$0xff] }
  0x16   :  { %376 = vmatpush3.bf16.msra.mxu0 %v375_v6  ;;  %v384_v17 = vpack.c.bf16 %v35_v16, %v34_v15  ;;  %v37_v19 = vld [vmem:[#allocation2 + $0x58] sm:$0xff]  ;;  %v38_v21 = vld [vmem:[#allocation2 + $0x60] sm:$0xff]  ;;  %v39_v22 = vld [vmem:[#allocation2 + $0x68] sm:$0xff]  ;;  %336 = vmatprep.mubr.msk.f32.mxu0 %vm471_vm0, %v472_v23  ;;  %v69_v42 = vsub.s32 0, %v68_v41  ;;  %v83_v45 = vsub.s32 1, %v68_v41  ;;  %v93_v47 = vsub.s32 2, %v68_v41 }
  0x17   :  { %377 = vmatprep.subr.bf16.mxu0 %v468_v2  ;;  %v387_v20 = vpack.c.bf16 %v37_v19, %v36_v18  ;;  %v45_v24 = vld [vmem:[#allocation2 + $0x98] sm:$0xff]  ;;  %v46_v25 = vld [vmem:[#allocation2 + $0xa0] sm:$0xff]  ;;  %v47_v26 = vld [vmem:[#allocation2 + $0xa8] sm:$0xff]  ;;  %371 = vmatprep.mubr.msk.f32.mxu1 %vm471_vm0, %v472_v23  ;;  %v390_v29 = vpack.c.bf16 %v39_v22, %v38_v21  ;;  %v103_v49 = vsub.s32 3, %v68_v41 }
  0x18   :  { %v399_v27 = vpack.c.bf16 %v46_v25, %v45_v24  ;;  %v48_v28 = vld [vmem:[#allocation2 + $0xb0] sm:$0xff]  ;;  %v41_v32 = vld [vmem:[#allocation2 + $0x78] sm:$0xff]  ;;  %v50_v34 = vld [vmem:[#allocation2 + $0xc0] sm:$0xff] }
  0x19   :  { %433 = vset.pattern.permute.xlu0 %v469_v12  ;;  %435 = vset.pattern.permute.xlu1 %v470_v13  ;;  %v40_v30 = vld [vmem:[#allocation2 + $0x70] sm:$0xff]  ;;  %v402_v31 = vpack.c.bf16 %v48_v28, %v47_v26  ;;  %v49_v33 = vld [vmem:[#allocation2 + $0xb8] sm:$0xff]  ;;  %v42_v37 = vld [vmem:[#allocation2 + $0x80] sm:$0xff] }
  0x1a   :  { %78 = vperm.xlu0 %433, %v25_v3   ;;  %98 = vperm.xlu1 %435, %v25_v3   ;;  %v393_v35 = vpack.c.bf16 %v41_v32, %v40_v30  ;;  %v405_v36 = vpack.c.bf16 %v50_v34, %v49_v33  ;;  %v43_v38 = vld [vmem:[#allocation2 + $0x88] sm:$0xff]  ;;  %v26_v43 = vld [vmem:[#allocation2] sm:$0xff]  ;;  %v52_v3 = vld [vmem:[#allocation2 + $0xd0] sm:$0xff] }
  0x1b   :  { %379 = vmatpush3.bf16.msra.mxu0 %v378_v9  ;;  %400 = vmatpush3.bf16.msra.mxu1 %v399_v27  ;;  %v396_v39 = vpack.c.bf16 %v43_v38, %v42_v37  ;;  %v70_v44 = vrot.slane %v26_v43, %v69_v42  ;;  %v84_v51 = vrot.slane %v26_v43, %v83_v45  ;;  %v267_v52 = vld [vmem:[#allocation2 + $0x8] ss:$0 sm:$0xff]  ;;  %v53_v5 = vld [vmem:[#allocation2 + $0xd8] sm:$0xff]  ;;  %v54_v6 = vld [vmem:[#allocation2 + $0xe0] sm:$0xff] }
  0x1c   :  { %380 = vmatprep.subr.bf16.mxu0 %v468_v2  ;;  %401 = vmatprep.subr.bf16.mxu1 %v468_v2  ;;  %v94_v53 = vrot.slane %v26_v43, %v93_v47  ;;  %v104_v54 = vrot.slane %v26_v43, %v103_v49  ;;  %v51_v1 = vld [vmem:[#allocation2 + $0xc8] sm:$0xff]  ;;  %v411_v7 = vpack.c.bf16 %v54_v6, %v53_v5  ;;  %v56_v9 = vld [vmem:[#allocation2 + $0xf0] sm:$0xff]  ;;  %v57_v11 = vld [vmem:[#allocation2 + $0xf8] sm:$0xff] }
  0x1d   :  { %v408_v4 = vpack.c.bf16 %v52_v3, %v51_v1  ;;  %v55_v8 = vld [vmem:[#allocation2 + $0xe8] sm:$0xff]  ;;  %v58_v12 = vld [vmem:[#allocation2 + $0x100] sm:$0xff]  ;;  %v60_v15 = vld [vmem:[#allocation2 + $0x110] sm:$0xff] }
  0x1e   :  { %436 = vset.pattern.permute.xlu0 %v470_v13  ;;  %v414_v10 = vpack.c.bf16 %v56_v9, %v55_v8  ;;  %v417_v13 = vpack.c.bf16 %v58_v12, %v57_v11  ;;  %v269_v25 = vld [vmem:[#allocation2 + $0x118] ss:$0 sm:$0xff] }
  0x1f   :  { %382 = vmatpush3.bf16.msra.mxu0 %v381_v14  ;;  %403 = vmatpush3.bf16.msra.mxu1 %v402_v31  ;;  %v59_v14 = vld [vmem:[#allocation2 + $0x108] sm:$0xff] }
  0x20   :  { %383 = vmatprep.subr.bf16.mxu0 %v468_v2  ;;  %404 = vmatprep.subr.bf16.mxu1 %v468_v2  ;;  %v420_v16 = vpack.c.bf16 %v60_v15, %v59_v14 }
  0x23   :  { %385 = vmatpush3.bf16.msra.mxu0 %v384_v17  ;;  %406 = vmatpush3.bf16.msra.mxu1 %v405_v36  ;;  %v268_v17 = vld [vmem:[#allocation2 + $0x90] ss:$0 sm:$0xff] }
  0x24   :  { %386 = vmatprep.subr.bf16.mxu0 %v468_v2  ;;  %407 = vmatprep.subr.bf16.mxu1 %v468_v2 }
  0x27   :  { %388 = vmatpush3.bf16.msra.mxu0 %v387_v20  ;;  %409 = vmatpush3.bf16.msra.mxu1 %v408_v4 }
  0x28   :  { %389 = vmatprep.subr.bf16.mxu0 %v468_v2  ;;  %410 = vmatprep.subr.bf16.mxu1 %v468_v2 }
  0x2b   :  { %391 = vmatpush3.bf16.msra.mxu0 %v390_v29  ;;  %412 = vmatpush3.bf16.msra.mxu1 %v411_v7 }
  0x2c   :  { %392 = vmatprep.subr.bf16.mxu0 %v468_v2  ;;  %413 = vmatprep.subr.bf16.mxu1 %v468_v2 }
  0x2f   :  { %394 = vmatpush3.bf16.msra.mxu0 %v393_v35  ;;  %415 = vmatpush3.bf16.msra.mxu1 %v414_v10 }
  0x30   :  { %395 = vmatprep.subr.bf16.mxu0 %v468_v2  ;;  %416 = vmatprep.subr.bf16.mxu1 %v468_v2 }
  0x33   :  { %397 = vmatpush3.bf16.msra.mxu0 %v396_v39  ;;  %418 = vmatpush3.bf16.msra.mxu1 %v417_v13 }
  0x34   :  { %419 = vmatprep.subr.bf16.mxu1 %v468_v2 }
  0x37   :  { %421 = vmatpush3.bf16.msra.mxu1 %v420_v16 }
  0x94   :  { %v65_v46 = vpop.permute.xlu0 %64  ;;  %v89_v48 = vpop.permute.xlu1 %88 }
  0x95   :  { %v71_v50 = vmul.f32 %v70_v44, %v65_v46  ;;  %v95_v59 = vmul.f32 %v94_v53, %v89_v48 }
  0x97   :  { %v76_v57 = vadd.f32 %v267_v52, %v71_v50 }
  0x99   :  { %v79_v55 = vpop.permute.xlu0 %78  ;;  %v99_v56 = vpop.permute.xlu1 %98 }
  0x9a   :  { %v85_v58 = vmul.f32 %v84_v51, %v79_v55  ;;  %v105_v61 = vmul.f32 %v104_v54, %v99_v56 }
  0x9c   :  { %v86_v60 = vadd.f32 %v85_v58, %v76_v57 }
  0x9e   :  { %v96_v62 = vadd.f32 %v95_v59, %v86_v60 }
  0xa0   :  { %v106_v63 = vadd.f32 %v105_v61, %v96_v62 }
  0xa2   :  { %v107_v0 = vmax.f32 %v106_v63, 0.0 }
  0xa4   :  { %337 = vmatmul.mubr.f32.vlgmr.msra.gmra.mrb[0].mxu0 %v107_v0 }
 0x177   :  { %v178_v18 = vpop.f32.mrb[0].mxu0 }
 0x178   :  { %v179_v19 = vadd.f32 %v268_v17, %v178_v18  ;;  %v338_v20 = vpop.f32.mrb[1].mxu0 }
 0x17a   :  { %v182_v21 = vmul.f32 0.5, %v179_v19 }
 0x17c   :  { %437 = vtanh.f32 %v182_v21 }
 0x186   :  { %v438_v22 = vpop.eup %437 }
 0x187   :  { %v184_v23 = vmul.f32 0.5, %v438_v22 }
 0x189   :  { %v185_v24 = vadd.f32 0.5, %v184_v23 }
 0x18b   :  { %372 = vmatmul.mubr.f32.vlgmr.msra.gmra.mrb[0].mxu1 %v185_v24 }
 0x25e   :  { %v256_v26 = vpop.f32.mrb[0].mxu1 }
 0x25f   :  { %v257_v27 = vadd.f32 %v269_v25, %v256_v26  ;;  %v373_v28 = vpop.f32.mrb[1].mxu1 }
 0x261   :  { %261 = vst.msk [vmem:[%s524_s2] sm:$0xff] %vm260_vm1, %v257_v27 }
 0x262   :  { %266 = vsyncpa [#allocation3], 1 }

</bundles_post_ra>
